<compile_context>
chip_gen: v7x
topology: tpu7x:2x2x1
jax: 0.10.0
libtpu: 0.0.40
codegen_flags: <defaults>
</compile_context>

<pallas_src>
import numpy as np
import jax
import jax.numpy as jnp
from jax.experimental import pallas as pl
from jax.experimental.pallas import tpu as pltpu

_LANE = 128


def _sublane(itemsize: int) -> int:
    # Native sublane packing: f32 -> 8, bf16 -> 16, int8/fp8 -> 32.
    return max(8, 32 // itemsize)


def _ceil_to(x: int, m: int) -> int:
    return -(-x // m) * m


def _chip_tuning():
    """(tile_byte_budget, scoped_vmem_cap) scaled with HBM BW per generation."""
    kind = ""
    try:
        kind = jax.devices()[0].device_kind.lower()
    except Exception:
        pass
    if "v7" in kind:
        # ~3.2 TB/s HBM but only 64 MiB VMEM: bigger tiles amortize the
        # ~0.35us per-step overhead; keep the scoped request well under 64 MiB.
        return 8 << 20, 40 << 20
    if "v6" in kind:
        return 4 << 20, 24 << 20
    # v5e (and default): 2 MiB tiles already ~93% of the ~0.8 TB/s roofline.
    return 2 << 20, 20 << 20


def _factor_trailing(T: int):
    """Split T = Rt * Ct with Ct lane-dense (128) and Rt maximized so the
    (sublane, lane) VMEM tiles are not padded whenever T % 128 == 0."""
    if T % _LANE == 0:
        return T // _LANE, _LANE
    return 1, T


def _factor_leading(P: int):
    """P = Pr * L with L a multiple of 128 (lane-dense output) when possible."""
    if P % _LANE == 0:
        return P // _LANE, _LANE
    return 1, P


# --------------------------------------------------------------------------
# Kernels
# --------------------------------------------------------------------------
def _copy_kernel(x_ref, o_ref):
    # Selected dim is pl.Squeezed(): this is a straight VMEM copy of the slice.
    o_ref[...] = x_ref[...]


def _make_last_dim_kernel(local_idx: int):
    def kernel(x_ref, o_ref):
        # x_ref: (TILE_Pr, L, Dblk) -- contiguous rows; pick the static lane
        # `local_idx` on-chip and store the (TILE_Pr, L) result lane-dense.
        x = x_ref[...]
        o_ref[...] = x[:, :, local_idx]
    return kernel


# --------------------------------------------------------------------------
# Paths
# --------------------------------------------------------------------------
def _select_mid_dim(x, index, P, D, T, out_shape, itemsize, sub,
                    tile_budget, vmem_cap):
    Rt, Ct = _factor_trailing(T)
    x4 = x.reshape(P, D, Rt, Ct)          # contiguous reshape only, no transpose

    pad_c = _ceil_to(Ct, _LANE)
    rows_budget = max(1, tile_budget // (pad_c * itemsize))   # padded sublane rows
    pad_slab = _ceil_to(Rt, sub)

    if pad_slab <= rows_budget:
        TILE_R = Rt
        TILE_P = int(min(P, max(1, rows_budget // pad_slab)))
    else:
        TILE_P = 1
        TILE_R = int(min(Rt, max(sub, (rows_budget // sub) * sub)))

    # Keep >=2 blocks on a parallel axis for large slices (v7x dual-TC; free
    # elsewhere).
    if TILE_P >= P and TILE_R >= Rt:
        slab_bytes = P * pad_slab * pad_c * itemsize
        if slab_bytes > (1 << 20):
            if P >= 2:
                TILE_P = -(-P // 2)
            elif Rt >= 2 * sub:
                TILE_R = _ceil_to(-(-Rt // 2), sub)

    grid = (pl.cdiv(P, TILE_P), pl.cdiv(Rt, TILE_R))

    # vmem limit from the PADDED block footprint (in + out, double buffered).
    padded_tile = TILE_P * _ceil_to(TILE_R, sub) * pad_c * itemsize
    vmem_limit = int(min(vmem_cap, max(16 << 20, 5 * padded_tile + (1 << 20))))

    out3 = pl.pallas_call(
        _copy_kernel,
        out_shape=jax.ShapeDtypeStruct((P, Rt, Ct), x.dtype),
        grid=grid,
        in_specs=[
            pl.BlockSpec(
                (TILE_P, pl.Squeezed(), TILE_R, Ct),
                # Static index baked in; the selected dim is squeezed so the
                # block index equals the element index.
                lambda p, r, _i=index: (p, _i, r, 0),
            )
        ],
        out_specs=pl.BlockSpec((TILE_P, TILE_R, Ct), lambda p, r: (p, r, 0)),
        compiler_params=pltpu.CompilerParams(
            dimension_semantics=("parallel", "parallel"),
            vmem_limit_bytes=vmem_limit,
        ),
    )(x4)
    return out3.reshape(out_shape)


def _select_last_dim(x, index, P, D, out_shape, itemsize, sub,
                     tile_budget, vmem_cap):
    Pr, L = _factor_leading(P)
    x3 = x.reshape(Pr, L, D)

    # DMA only a lane-aligned window of the last dim that contains `index`
    # (full D when D is not a multiple of 128).
    Dblk = _LANE if (D % _LANE == 0) else D
    d_blk_idx = index // Dblk
    local_idx = index - d_blk_idx * Dblk

    pad_L = _ceil_to(L, sub)
    pad_D = _ceil_to(Dblk, _LANE)
    row_bytes = pad_L * pad_D * itemsize

    tp = max(1, tile_budget // row_bytes)
    if tp >= Pr:
        TILE_Pr = Pr
    else:
        TILE_Pr = min(Pr, max(sub, (tp // sub) * sub))

    # Keep >=2 blocks on the parallel axis for large slices.
    if TILE_Pr >= Pr and Pr >= 2 * sub and Pr * pad_L * itemsize > (1 << 20):
        TILE_Pr = _ceil_to(-(-Pr // 2), sub)

    grid = (pl.cdiv(Pr, TILE_Pr),)

    padded_in = TILE_Pr * pad_L * pad_D * itemsize
    padded_out = _ceil_to(TILE_Pr, sub) * pad_L * itemsize
    vmem_limit = int(min(vmem_cap,
                         max(16 << 20,
                             3 * padded_in + 3 * padded_out + (1 << 20))))

    out2 = pl.pallas_call(
        _make_last_dim_kernel(local_idx),
        out_shape=jax.ShapeDtypeStruct((Pr, L), x.dtype),
        grid=grid,
        in_specs=[
            pl.BlockSpec((TILE_Pr, L, Dblk),
                         lambda p, _d=d_blk_idx: (p, 0, _d)),
        ],
        out_specs=pl.BlockSpec((TILE_Pr, L), lambda p: (p, 0)),
        compiler_params=pltpu.CompilerParams(
            dimension_semantics=("parallel",),
            vmem_limit_bytes=vmem_limit,
        ),
    )(x3)
    return out2.reshape(out_shape)


# --------------------------------------------------------------------------
# Public entry point
# --------------------------------------------------------------------------
def select_int(x, dim: int, index: int):
    """Equivalent of torch.select(x, dim, index) for static dim / index."""
    ndim = x.ndim
    if ndim == 0:
        raise ValueError("select() cannot be applied to a 0-dim tensor")
    dim = dim % ndim
    D = x.shape[dim]
    if not (-D <= index < D):
        raise IndexError(
            f"select(): index {index} out of range for dim {dim} of size {D}")
    if index < 0:
        index += D

    out_shape = x.shape[:dim] + x.shape[dim + 1:]
    P = int(np.prod(x.shape[:dim], dtype=np.int64)) if dim > 0 else 1
    T = int(np.prod(x.shape[dim + 1:], dtype=np.int64)) if dim < ndim - 1 else 1

    # Degenerate: empty output -> nothing to copy.
    if P * T == 0:
        return jnp.zeros(out_shape, x.dtype)

    itemsize = jnp.dtype(x.dtype).itemsize
    sub = _sublane(itemsize)
    tile_budget, vmem_cap = _chip_tuning()

    if T == 1:
        return _select_last_dim(x, index, P, D, out_shape, itemsize, sub,
                                tile_budget, vmem_cap)
    return _select_mid_dim(x, index, P, D, T, out_shape, itemsize, sub,
                           tile_budget, vmem_cap)


if __name__ == "__main__":
    key = jax.random.PRNGKey(0)
    # NCHW example consistent with the test module: (2, 4, 16, 16)
    x = jax.random.normal(key, (2, 4, 16, 16), dtype=jnp.float32)
    xn = np.asarray(x)

    # Channel select (mid-dim, lane-dense path).
    y = jax.block_until_ready(select_int(x, dim=1, index=2))
    np.testing.assert_array_equal(np.asarray(y), xn[:, 2, :, :])

    # Negative dim / negative index (last-dim on-chip select path).
    y2 = jax.block_until_ready(select_int(x, dim=-1, index=-1))
    np.testing.assert_array_equal(np.asarray(y2), xn[..., -1])

    # Leading-dim select (P == 1 path).
    y3 = jax.block_until_ready(select_int(x, dim=0, index=1))
    np.testing.assert_array_equal(np.asarray(y3), xn[1])

    # Inner spatial dim select.
    y4 = jax.block_until_ready(select_int(x, dim=2, index=7))
    np.testing.assert_array_equal(np.asarray(y4), xn[:, :, 7, :])

    print("KERNEL_OK")
</pallas_src>

<mosaic_0001>
module attributes {stable_mosaic.version = 11 : i64} {
  func.func @_copy_kernel(%arg0: i32, %arg1: i32, %arg2: memref<2x1x2x128xf32, #tpu.memory_space<vmem>>, %arg3: memref<2x2x128xf32, #tpu.memory_space<vmem>>) attributes {dimension_semantics = [#tpu.dimension_semantics<parallel>, #tpu.dimension_semantics<parallel>], iteration_bounds = array<i64: 1, 1>, scalar_prefetch = 0 : i64, scratch_operands = 0 : i64, tpu.core_type = #tpu.core_type<tc>, window_params = [{transform_indices = @transform_0, window_bounds = array<i64: 2, 1, 2, 128>}, {transform_indices = @transform_1, window_bounds = array<i64: 2, 2, 128>}]} {
    %c0 = arith.constant 0 : index
    %c0_0 = arith.constant 0 : index
    %c0_1 = arith.constant 0 : index
    %c0_2 = arith.constant 0 : index
    %0 = vector.load %arg2[%c0, %c0_0, %c0_1, %c0_2] : memref<2x1x2x128xf32, #tpu.memory_space<vmem>>, vector<2x1x2x128xf32>
    %1 = vector.shape_cast %0 : vector<2x1x2x128xf32> to vector<2x2x128xf32>
    %c0_3 = arith.constant 0 : index
    %c0_4 = arith.constant 0 : index
    %c0_5 = arith.constant 0 : index
    %2 = vector.load %arg3[%c0_3, %c0_4, %c0_5] : memref<2x2x128xf32, #tpu.memory_space<vmem>>, vector<2x2x128xf32>
    tpu.vector_store %arg3[%c0_3, %c0_4, %c0_5], %1 {strides = array<i32>} : memref<2x2x128xf32, #tpu.memory_space<vmem>>, vector<2x2x128xf32>,
    return
  }
  func.func @transform_0(%arg0: i32, %arg1: i32) -> (i32, i32, i32, i32) {
    %c2_i32 = arith.constant 2 : i32
    %c0_i32 = arith.constant 0 : i32
    %c0_i32_0 = arith.constant 0 : i32
    return %arg0, %c2_i32, %arg1, %c0_i32 : i32, i32, i32, i32
  }
  func.func @transform_1(%arg0: i32, %arg1: i32) -> (i32, i32, i32) {
    %c0_i32 = arith.constant 0 : i32
    %c0_i32_0 = arith.constant 0 : i32
    return %arg0, %arg1, %c0_i32 : i32, i32, i32
  }
}

</mosaic_0001>

<bundles_post_ra>
// kernel: tpu_custom_call.1
= control target key start
LH: loop header
LB: loop body
LE: loop exit
PB: predicated region body
PF: predicated region fallthrough
CT: control target
= control target key end

     0   :  { %6 = vsyncpa [#allocation3], 0  ;;  %s140_s0 = inlined_call_operand.hbm [shape: f32[2,4,2,128], index: 0, kind: input, shape index: {}]   ;;  %s141_s1 = inlined_call_operand.hbm [shape: f32[2,2,128], index: 1, kind: output, shape index: {}]  }
   0x1   :  { %7 = vsyncpa [#allocation4], 0  ;;  %s13_s8 = scalar_lea.hbm %s140_s0, 64  ;;  %s101_s9 = smov [#allocation2]  }
   0x2   :  { %s14_s10 = sshll.u32 %s101_s9, 4  ;;  %s74_s13 = scalar_lea.hbm %s140_s0, 128  ;;  %s15_s10 = int_to_ptr.vmem [resolvable:$true] %s14_s10 }
   0x3   :  { %p51_p0 = scmp.ne.s32.totalorder %s13_s8, %s74_s13  ;;  %s52_s16 = scalar_lea.hbm %s140_s0, 256 }
   0x4   :  { %p53_p1 = scmp.lt.u32.totalorder %s13_s8, %s140_s0  ;;  %p54_p2 = scmp.lt.u32.totalorder %s52_s16, %s74_s13 }
   0x5   :  { %p56_p4 = scmp.lt.u32.totalorder %s74_s13, %s13_s8 }
   0x6   :  { %p55_p3 = por %p54_p2, %p53_p1 }
   0x8   :  { %p57_p5 = por %p56_p4, %p55_p3 }
   0xa   :  { %p58_p6 = pnand %p57_p5, %p51_p0 }
   0xc   :  { %61 = shalt.err (!%p58_p6)
}
   0xd   :  { %s62_s19 = scalar_lea.vmem %s15_s10, 64  ;;  %p67_p8 = scmp.lt.s32.totalorder %s15_s10, %s15_s10 }
   0xe   :  { %p63_p7 = scmp.ne.s32.totalorder %s15_s10, %s62_s19  ;;  %p68_p9 = scmp.lt.s32.totalorder %s62_s19, %s62_s19 }
  0x10   :  { %p69_p10 = por %p68_p9, %p67_p8 }
  0x12   :  { %p70_p11 = pnand %p69_p10, %p63_p7 }
  0x14   :  { %73 = shalt.err (!%p70_p11)
}
  0x15   :  { %s102_s20 = smov 128   ;;  %s103_s21 = smov 32  }
  0x16   :  { %s104_s22 = smov 2  }
  0x17   :  { %20 = dma.hbm_to_vmem [thread:$0]  %s13_s8, 64, %s15_s10, [#allocation3], %s102_s20, %s103_s21, %s104_s22  }
  0x18   :  { %97 = dma.done.wait [#allocation3], 64  }
  0x19   :  { %98 = vsyncadd [#allocation3], 4294967232  ;;  %s105_s0 = smov [#allocation5]   ;;  %v24_v0 = vld [vmem:[#allocation2] sm:$0xf]  }
  0x1a   :  { %s33_s23 = sshll.u32 %s105_s0, 4  ;;  %26 = vst [vmem:[#allocation5] sm:$0xf] %v24_v0   ;;  %s34_s23 = int_to_ptr.vmem [resolvable:$true] %s33_s23 }
  0x1b   :  { %s75_s24 = scalar_lea.vmem %s34_s23, 64  ;;  %p80_p13 = scmp.lt.s32.totalorder %s34_s23, %s34_s23 }
  0x1c   :  { %p76_p12 = scmp.ne.s32.totalorder %s34_s23, %s75_s24  ;;  %p81_p0 = scmp.lt.s32.totalorder %s75_s24, %s75_s24 }
  0x1e   :  { %p82_p1 = por %p81_p0, %p80_p13 }
  0x20   :  { %p83_p2 = pnand %p82_p1, %p76_p12 }
  0x22   :  { %86 = shalt.err (!%p83_p2)
}
  0x23   :  { %s87_s27 = scalar_lea.hbm %s141_s1, 64 }
  0x24   :  { %p88_p3 = scmp.ne.s32.totalorder %s141_s1, %s87_s27  ;;  %p91_p4 = scmp.lt.u32.totalorder %s87_s27, %s141_s1 }
  0x26   :  { %p93_p5 = pnand %p91_p4, %p88_p3 }
  0x28   :  { %96 = shalt.err (!%p93_p5)
}
  0x29   :  { %39 = dma.vmem_to_hbm [thread:$0]  %s34_s23, 64, %s141_s1, [#allocation4], %s103_s21, %s103_s21, %s104_s22  }
  0x2a   :  { %99 = dma.done.wait [#allocation4], 64  }
  0x2b   :  { %100 = vsyncadd [#allocation4], 4294967232 }
  0x2c   :  { %43 = vsyncpa [#allocation3], 1 }
  0x2d   :  { %44 = vsyncpa [#allocation4], 1 }

</bundles_post_ra>
